<compile_context>
chip_gen: v7x
topology: tpu7x:2x2x1
jax: 0.10.0
libtpu: 0.0.40
codegen_flags: <defaults>
</compile_context>

<pallas_src>
import functools

import jax
import jax.numpy as jnp
from jax.experimental import pallas as pl
from jax.experimental.pallas import tpu as pltpu

_LANE = 128
_ACC_SUB = 8  # f32 accumulator sublane granularity (one vreg = 8 x 128)


# --------------------------------------------------------------------------- #
# Small helpers (all run at trace time).
# --------------------------------------------------------------------------- #
def _cdiv(a, b):
    return -(-a // b)


def _round_up(x, m):
    return _cdiv(x, m) * m


def _sublane_quantum(dtype):
    # 8 for f32, 16 for bf16, 32 for int8/fp8 (packed-sublane vreg quanta).
    return max(_ACC_SUB, (8 * 32) // (jnp.dtype(dtype).itemsize * 8))


def _vmem_capacity_bytes(default=64 << 20):
    try:
        info = pltpu.get_tpu_info()
        cap = getattr(info, "vmem_capacity_bytes", None)
        if cap:
            return int(cap)
    except Exception:
        pass
    return default


def _device_kind():
    try:
        return jax.devices()[0].device_kind.lower()
    except Exception:
        return ""


def _num_tensorcores():
    """Best-effort TC-per-chip count; defaults to 1 (safe) if unknown."""
    try:
        info = pltpu.get_tpu_info()
        for attr in ("num_cores", "core_count", "num_tensorcores",
                     "tensorcores_per_chip", "cores_per_chip"):
            v = getattr(info, attr, None)
            if v:
                return max(1, int(v))
    except Exception:
        pass
    kind = _device_kind()
    if "7x" in kind or "v7" in kind:
        return 2
    return 1


def _is_v5e():
    kind = _device_kind()
    return ("v5e" in kind) or ("v5 lite" in kind) or ("v5litepod" in kind)


# --------------------------------------------------------------------------- #
# Kernel: per-batch-row partial sums of (pred*target) and (pred+target).
# Grid = (n_par [parallel], batch_blocks [parallel], k_blocks [arbitrary]).
# --------------------------------------------------------------------------- #
def _dice_partial_kernel(pred_ref, target_ref, inter_ref, denom_ref, *,
                         c_valid, n_blk_pp, ragged):
    par = pl.program_id(0)
    k = pl.program_id(2)

    # Zero the resident accumulators on the first reduction step of each
    # (parallel-split, batch-block) pair.
    @pl.when(k == 0)
    def _():
        inter_ref[...] = jnp.zeros_like(inter_ref)
        denom_ref[...] = jnp.zeros_like(denom_ref)

    p = pred_ref[...].astype(jnp.float32)      # (nb, tile_r, 128)
    t = target_ref[...].astype(jnp.float32)
    nb, tile_r, lane = p.shape

    def accumulate(pv, tv):
        # Defer the 8->1 sublane and 128->1 lane reductions to the wrapper:
        # here we only do vreg-aligned (8, 128) adds (pure VPU, no per-step
        # XLU cross-sublane reduce).  The reshape is layout-preserving.
        pt = (pv * tv).reshape(nb, tile_r // _ACC_SUB, _ACC_SUB, lane)
        sm = (pv + tv).reshape(nb, tile_r // _ACC_SUB, _ACC_SUB, lane)
        inter_ref[...] += jnp.sum(pt, axis=1)[None]   # (1, nb, 8, 128)
        denom_ref[...] += jnp.sum(sm, axis=1)[None]

    if not ragged:
        # Every block fully covers valid chunks: unconditional fast path.
        accumulate(p, t)
    else:
        blk = par * n_blk_pp + k                      # logical chunk-block idx
        is_full = (blk + 1) * tile_r <= c_valid

        @pl.when(is_full)
        def _():
            accumulate(p, t)

        @pl.when(jnp.logical_not(is_full))
        def _():
            # Mask chunks past the real extent (OOB DMA region is undefined).
            chunk = blk * tile_r + jax.lax.broadcasted_iota(
                jnp.int32, (nb, tile_r, lane), 1)
            valid = chunk < c_valid
            accumulate(jnp.where(valid, p, 0.0), jnp.where(valid, t, 0.0))


# --------------------------------------------------------------------------- #
# Wrapper.
# --------------------------------------------------------------------------- #
@jax.jit
def dice_loss(pred, target):
    """Pallas TPU implementation of DiceLoss.forward (smooth = 1)."""
    n = pred.shape[0]
    pred_flat = pred.reshape(n, -1)
    target_flat = target.reshape(n, -1)
    d = pred_flat.shape[1]

    eb_pair = (jnp.dtype(pred_flat.dtype).itemsize
               + jnp.dtype(target_flat.dtype).itemsize)
    sub_q = max(_sublane_quantum(pred_flat.dtype),
                _sublane_quantum(target_flat.dtype))

    # ---- lane-dense fold: free reshape when D is 128-aligned (common case) --
    if d % _LANE != 0:
        # Pad only to the next 128 multiple (< 128 cols).  Zero padding is
        # sum-safe.  TODO(synk): a flat-2D kernel variant would make this
        # (rare) non-128-aligned case copy-free as well.
        d_pad = _round_up(d, _LANE)
        pred_flat = jnp.pad(pred_flat, ((0, 0), (0, d_pad - d)))
        target_flat = jnp.pad(target_flat, ((0, 0), (0, d_pad - d)))
        d = d_pad
    c_full = d // _LANE
    pred3 = pred_flat.reshape(n, c_full, _LANE)
    target3 = target_flat.reshape(n, c_full, _LANE)

    # ---- generation-aware VMEM budgets --------------------------------------
    vmem_limit = int(min(_vmem_capacity_bytes() // 2, 64 << 20))
    block_budget = (2 << 20) if _is_v5e() else (4 << 20)   # per (pred,target) block pair
    block_budget = min(block_budget, vmem_limit // 8)

    # ---- batch blocking (keeps the minimum block within budget for large N) -
    nb_blk = min(n, max(1, block_budget // (sub_q * _LANE * eb_pair)))
    n_b = _cdiv(n, nb_blk)

    # ---- reduction-axis tiling ----------------------------------------------
    tile_r_budget = max(
        sub_q, (block_budget // (nb_blk * _LANE * eb_pair)) // sub_q * sub_q)
    tile_r = min(tile_r_budget, _round_up(c_full, sub_q))
    n_blk_total = _cdiv(c_full, tile_r)
    tile_r = _round_up(_cdiv(c_full, n_blk_total), sub_q)   # rebalance
    n_blk_total = _cdiv(c_full, tile_r)

    # ---- 2-TC split of the reduction axis (v7x); parity-independent ---------
    n_par = 2 if (_num_tensorcores() >= 2 and n_blk_total >= 2) else 1
    n_blk_pp = _cdiv(n_blk_total, n_par)
    ragged = (n_par * n_blk_pp * tile_r) != c_full
    blk_clamp = n_blk_total - 1

    kernel = functools.partial(_dice_partial_kernel, c_valid=c_full,
                               n_blk_pp=n_blk_pp, ragged=ragged)

    def in_map(p, b, k):
        # Clamp so a fully-out-of-range block (odd block count split over two
        # cores) still issues an in-bounds DMA; its contribution is masked.
        return (b, jnp.minimum(p * n_blk_pp + k, blk_clamp), 0)

    out_map = lambda p, b, k: (p, b, 0, 0)

    cost = pl.CostEstimate(
        flops=4 * n * d,
        transcendentals=0,
        bytes_accessed=n * d * eb_pair + 2 * n_par * n * _ACC_SUB * _LANE * 4,
    )

    inter, denom = pl.pallas_call(
        kernel,
        out_shape=(
            jax.ShapeDtypeStruct((n_par, n, _ACC_SUB, _LANE), jnp.float32),
            jax.ShapeDtypeStruct((n_par, n, _ACC_SUB, _LANE), jnp.float32),
        ),
        grid_spec=pltpu.PrefetchScalarGridSpec(
            num_scalar_prefetch=0,
            grid=(n_par, n_b, n_blk_pp),             # reduction axis last
            in_specs=[
                pl.BlockSpec((nb_blk, tile_r, _LANE), in_map),
                pl.BlockSpec((nb_blk, tile_r, _LANE), in_map),
            ],
            out_specs=(
                pl.BlockSpec((1, nb_blk, _ACC_SUB, _LANE), out_map),
                pl.BlockSpec((1, nb_blk, _ACC_SUB, _LANE), out_map),
            ),
        ),
        compiler_params=pltpu.CompilerParams(
            dimension_semantics=("parallel", "parallel", "arbitrary"),
            vmem_limit_bytes=vmem_limit,
        ),
        cost_estimate=cost,
    )(pred3, target3)

    # Tiny final combine in plain JAX: parallel-split + sublane + lane reduce,
    # dice score, mean.
    inter_b = jnp.sum(inter, axis=(0, 2, 3))    # (n,)
    denom_b = jnp.sum(denom, axis=(0, 2, 3))    # (n,)
    smooth = jnp.float32(1.0)
    dice_score = (2.0 * inter_b + smooth) / (denom_b + smooth)
    return 1.0 - jnp.sum(dice_score) / jnp.float32(n)


def _dice_loss_ref(pred, target):
    n = pred.shape[0]
    p = pred.reshape(n, -1).astype(jnp.float32)
    t = target.reshape(n, -1).astype(jnp.float32)
    smooth = 1.0
    inter = jnp.sum(p * t, axis=1)
    score = (2.0 * inter + smooth) / (jnp.sum(p, axis=1) + jnp.sum(t, axis=1) + smooth)
    return 1.0 - jnp.sum(score) / n


if __name__ == "__main__":
    key = jax.random.PRNGKey(0)
    k1, k2, k3, k4 = jax.random.split(key, 4)

    # Primary small shapes: batch=2, channels=4, spatial=16x16 (D=1024, 128-aligned).
    pred = jax.nn.sigmoid(jax.random.normal(k1, (2, 4, 16, 16), dtype=jnp.float32))
    target = (jax.random.uniform(k2, (2, 4, 16, 16)) > 0.5).astype(jnp.float32)

    loss = dice_loss(pred, target)
    jax.block_until_ready(loss)
    ref = _dice_loss_ref(pred, target)
    assert jnp.allclose(loss, ref, rtol=1e-5, atol=1e-5), (loss, ref)

    # Secondary check: D=1200 (not 128-aligned) exercises the masked ragged block.
    pred2 = jax.nn.sigmoid(jax.random.normal(k3, (3, 3, 20, 20), dtype=jnp.float32))
    target2 = (jax.random.uniform(k4, (3, 3, 20, 20)) > 0.5).astype(jnp.float32)
    loss2 = dice_loss(pred2, target2)
    jax.block_until_ready(loss2)
    ref2 = _dice_loss_ref(pred2, target2)
    assert jnp.allclose(loss2, ref2, rtol=1e-5, atol=1e-5), (loss2, ref2)

    print("KERNEL_OK")
</pallas_src>

<mosaic_0001>
module attributes {stable_mosaic.version = 11 : i64} {
  func.func @_dice_partial_kernel(%arg0: i32, %arg1: i32, %arg2: i32, %arg3: memref<2x8x128xf32, #tpu.memory_space<vmem>>, %arg4: memref<2x8x128xf32, #tpu.memory_space<vmem>>, %arg5: memref<1x2x8x128xf32, #tpu.memory_space<vmem>>, %arg6: memref<1x2x8x128xf32, #tpu.memory_space<vmem>>) attributes {dimension_semantics = [#tpu.dimension_semantics<parallel>, #tpu.dimension_semantics<parallel>, #tpu.dimension_semantics<arbitrary>], iteration_bounds = array<i64: 1, 1, 1>, scalar_prefetch = 0 : i64, scratch_operands = 0 : i64, tpu.core_type = #tpu.core_type<tc>, window_params = [{transform_indices = @transform_0, window_bounds = array<i64: 2, 8, 128>}, {transform_indices = @transform_1, window_bounds = array<i64: 2, 8, 128>}, {transform_indices = @transform_2, window_bounds = array<i64: 1, 2, 8, 128>}, {transform_indices = @transform_3, window_bounds = array<i64: 1, 2, 8, 128>}]} {
    %c0_i32 = arith.constant 0 : i32
    %0 = arith.cmpi eq, %arg2, %c0_i32 : i32
    %1 = arith.extui %0 : i1 to i32
    %c0_i32_0 = arith.constant 0 : i32
    %2 = arith.cmpi ne, %1, %c0_i32_0 : i32
    scf.if %2 {
      %cst_23 = arith.constant 0.000000e+00 : f32
      %19 = vector.broadcast %cst_23 : f32 to vector<1x2x8x128xf32>
      %c0_24 = arith.constant 0 : index
      %c0_25 = arith.constant 0 : index
      %c0_26 = arith.constant 0 : index
      %c0_27 = arith.constant 0 : index
      %20 = vector.load %arg5[%c0_24, %c0_25, %c0_26, %c0_27] : memref<1x2x8x128xf32, #tpu.memory_space<vmem>>, vector<1x2x8x128xf32>
      tpu.vector_store %arg5[%c0_24, %c0_25, %c0_26, %c0_27], %19 {strides = array<i32>} : memref<1x2x8x128xf32, #tpu.memory_space<vmem>>, vector<1x2x8x128xf32>,
      %cst_28 = arith.constant 0.000000e+00 : f32
      %21 = vector.broadcast %cst_28 : f32 to vector<1x2x8x128xf32>
      %c0_29 = arith.constant 0 : index
      %c0_30 = arith.constant 0 : index
      %c0_31 = arith.constant 0 : index
      %c0_32 = arith.constant 0 : index
      %22 = vector.load %arg6[%c0_29, %c0_30, %c0_31, %c0_32] : memref<1x2x8x128xf32, #tpu.memory_space<vmem>>, vector<1x2x8x128xf32>
      tpu.vector_store %arg6[%c0_29, %c0_30, %c0_31, %c0_32], %21 {strides = array<i32>} : memref<1x2x8x128xf32, #tpu.memory_space<vmem>>, vector<1x2x8x128xf32>,
    } else {
    }
    %c0 = arith.constant 0 : index
    %c0_1 = arith.constant 0 : index
    %c0_2 = arith.constant 0 : index
    %3 = vector.load %arg3[%c0, %c0_1, %c0_2] : memref<2x8x128xf32, #tpu.memory_space<vmem>>, vector<2x8x128xf32>
    %c0_3 = arith.constant 0 : index
    %c0_4 = arith.constant 0 : index
    %c0_5 = arith.constant 0 : index
    %4 = vector.load %arg4[%c0_3, %c0_4, %c0_5] : memref<2x8x128xf32, #tpu.memory_space<vmem>>, vector<2x8x128xf32>
    %5 = arith.mulf %3, %4 : vector<2x8x128xf32>
    %6 = vector.shape_cast %5 : vector<2x8x128xf32> to vector<2x1x8x128xf32>
    %7 = arith.addf %3, %4 : vector<2x8x128xf32>
    %8 = vector.shape_cast %7 : vector<2x8x128xf32> to vector<2x1x8x128xf32>
    %c0_6 = arith.constant 0 : index
    %c0_7 = arith.constant 0 : index
    %c0_8 = arith.constant 0 : index
    %c0_9 = arith.constant 0 : index
    %9 = vector.load %arg5[%c0_6, %c0_7, %c0_8, %c0_9] : memref<1x2x8x128xf32, #tpu.memory_space<vmem>>, vector<1x2x8x128xf32>
    %cst = arith.constant dense<0.000000e+00> : vector<2x8x128xf32>
    %10 = vector.multi_reduction <add>, %6, %cst [1] : vector<2x1x8x128xf32> to vector<2x8x128xf32>
    %11 = vector.shape_cast %10 : vector<2x8x128xf32> to vector<1x2x8x128xf32>
    %12 = arith.addf %9, %11 : vector<1x2x8x128xf32>
    %c0_10 = arith.constant 0 : index
    %c0_11 = arith.constant 0 : index
    %c0_12 = arith.constant 0 : index
    %c0_13 = arith.constant 0 : index
    %13 = vector.load %arg5[%c0_10, %c0_11, %c0_12, %c0_13] : memref<1x2x8x128xf32, #tpu.memory_space<vmem>>, vector<1x2x8x128xf32>
    tpu.vector_store %arg5[%c0_10, %c0_11, %c0_12, %c0_13], %12 {strides = array<i32>} : memref<1x2x8x128xf32, #tpu.memory_space<vmem>>, vector<1x2x8x128xf32>,
    %c0_14 = arith.constant 0 : index
    %c0_15 = arith.constant 0 : index
    %c0_16 = arith.constant 0 : index
    %c0_17 = arith.constant 0 : index
    %14 = vector.load %arg6[%c0_14, %c0_15, %c0_16, %c0_17] : memref<1x2x8x128xf32, #tpu.memory_space<vmem>>, vector<1x2x8x128xf32>
    %cst_18 = arith.constant dense<0.000000e+00> : vector<2x8x128xf32>
    %15 = vector.multi_reduction <add>, %8, %cst_18 [1] : vector<2x1x8x128xf32> to vector<2x8x128xf32>
    %16 = vector.shape_cast %15 : vector<2x8x128xf32> to vector<1x2x8x128xf32>
    %17 = arith.addf %14, %16 : vector<1x2x8x128xf32>
    %c0_19 = arith.constant 0 : index
    %c0_20 = arith.constant 0 : index
    %c0_21 = arith.constant 0 : index
    %c0_22 = arith.constant 0 : index
    %18 = vector.load %arg6[%c0_19, %c0_20, %c0_21, %c0_22] : memref<1x2x8x128xf32, #tpu.memory_space<vmem>>, vector<1x2x8x128xf32>
    tpu.vector_store %arg6[%c0_19, %c0_20, %c0_21, %c0_22], %17 {strides = array<i32>} : memref<1x2x8x128xf32, #tpu.memory_space<vmem>>, vector<1x2x8x128xf32>,
    return
  }
  func.func @transform_0(%arg0: i32, %arg1: i32, %arg2: i32) -> (i32, i32, i32) {
    %c1_i32 = arith.constant 1 : i32
    %0 = arith.muli %arg0, %c1_i32 : i32
    %1 = arith.addi %0, %arg2 : i32
    %c0_i32 = arith.constant 0 : i32
    %2 = arith.minsi %1, %c0_i32 : i32
    %c0_i32_0 = arith.constant 0 : i32
    %c0_i32_1 = arith.constant 0 : i32
    return %arg1, %2, %c0_i32_0 : i32, i32, i32
  }
  func.func @transform_1(%arg0: i32, %arg1: i32, %arg2: i32) -> (i32, i32, i32) {
    %c1_i32 = arith.constant 1 : i32
    %0 = arith.muli %arg0, %c1_i32 : i32
    %1 = arith.addi %0, %arg2 : i32
    %c0_i32 = arith.constant 0 : i32
    %2 = arith.minsi %1, %c0_i32 : i32
    %c0_i32_0 = arith.constant 0 : i32
    %c0_i32_1 = arith.constant 0 : i32
    return %arg1, %2, %c0_i32_0 : i32, i32, i32
  }
  func.func @transform_2(%arg0: i32, %arg1: i32, %arg2: i32) -> (i32, i32, i32, i32) {
    %c0_i32 = arith.constant 0 : i32
    %c0_i32_0 = arith.constant 0 : i32
    %c0_i32_1 = arith.constant 0 : i32
    return %arg0, %arg1, %c0_i32, %c0_i32_0 : i32, i32, i32, i32
  }
  func.func @transform_3(%arg0: i32, %arg1: i32, %arg2: i32) -> (i32, i32, i32, i32) {
    %c0_i32 = arith.constant 0 : i32
    %c0_i32_0 = arith.constant 0 : i32
    %c0_i32_1 = arith.constant 0 : i32
    return %arg0, %arg1, %c0_i32, %c0_i32_0 : i32, i32, i32, i32
  }
}

</mosaic_0001>

<bundles_post_ra>
// kernel: dice_loss.1
= control target key start
LH: loop header
LB: loop body
LE: loop exit
PB: predicated region body
PF: predicated region fallthrough
CT: control target
= control target key end

     0   :  { %s164_s0 = inlined_call_operand.vmem [shape: f32[2,8,128], index: 0, kind: input, shape index: {}]   ;;  %s165_s1 = inlined_call_operand.vmem [shape: f32[2,8,128], index: 1, kind: input, shape index: {}]   ;;  %s166_s2 = inlined_call_operand.vmem [shape: f32[1,2,8,128], index: 2, kind: output, shape index: {0}]   ;;  %s167_s3 = inlined_call_operand.vmem [shape: f32[1,2,8,128], index: 3, kind: output, shape index: {1}]  }
   0x1   :  { %v75_v0 = vld [vmem:[%s164_s0] sm:$0xff]  ;;  %v76_v2 = vld [vmem:[%s164_s0 + $0x8] sm:$0xff] }
   0x2   :  { %v77_v1 = vld [vmem:[%s165_s1] sm:$0xff]  ;;  %v78_v4 = vld [vmem:[%s165_s1 + $0x8] sm:$0xff] }
   0x3   :  { %v79_v3 = vmul.f32 %v77_v1, %v75_v0  ;;  %v81_v5 = vadd.f32 %v77_v1, %v75_v0  ;;  %v80_v6 = vmul.f32 %v78_v4, %v76_v2  ;;  %v82_v7 = vadd.f32 %v78_v4, %v76_v2 }
   0x5   :  { %89 = vst [vmem:[%s166_s2] sm:$0xff] %v79_v3  ;;  %97 = vst [vmem:[%s167_s3] sm:$0xff] %v81_v5 }
   0x6   :  { %90 = vst [vmem:[%s166_s2 + $0x8] sm:$0xff] %v80_v6  ;;  %98 = vst [vmem:[%s167_s3 + $0x8] sm:$0xff] %v82_v7 }

</bundles_post_ra>
